<compile_context>
chip_gen: v7x
topology: tpu7x:2x2x1
jax: 0.10.0
libtpu: 0.0.40
codegen_flags: <defaults>
</compile_context>

<pallas_src>
import jax
import jax.numpy as jnp
from jax.experimental import pallas as pl
from jax.experimental.pallas import tpu as pltpu


# ----------------------------------------------------------------------------
# Small helpers (padded-VMEM-aware tiling)
# ----------------------------------------------------------------------------
def _round_up(n, m):
    return -(-int(n) // int(m)) * int(m)


def _sublane_multiple(dtype):
    # Second-minor (sublane) tile multiple: f32 -> 8, bf16 -> 16, int8 -> 32.
    return max(8, 32 // jnp.dtype(dtype).itemsize)


def _lane_row_bytes(n, dtype):
    # Bytes of one sublane row once the minor (lane) dim is padded to 128.
    return _round_up(n, 128) * jnp.dtype(dtype).itemsize


def _vmem_budgets():
    # Generation-aware VMEM sizing: 128 MiB parts (v5e/v6e) get ~96 MiB scoped
    # limit, 64 MiB parts (v7x per-TC) get ~48 MiB.  The block budget leaves
    # headroom for compiler-internal scratch and dot intermediates.
    try:
        cap = int(pltpu.get_tpu_info().vmem_capacity_bytes)
    except Exception:
        cap = 64 * 1024 * 1024
    limit = min((cap * 3) // 4, 100 * 1024 * 1024)
    budget = (limit * 3) // 4
    return budget, limit


# ----------------------------------------------------------------------------
# Kernels
# ----------------------------------------------------------------------------
def _shared_kernel(x_ref, w_ref, b_ref, o_ref):
    # x_ref: (TR, W)   w_ref: (F, W)   b_ref: (1, F)   o_ref: (TR, F)
    # Contract on W of both operands (no w.T); F lands in lanes -> dense stores.
    out = jax.lax.dot_general(
        x_ref[...], w_ref[...],
        dimension_numbers=(((1,), (1,)), ((), ())),
        preferred_element_type=jnp.float32)
    o_ref[...] = (out + b_ref[...]).astype(o_ref.dtype)


def _individual_kernel(x_ref, w_ref, b_ref, o_ref):
    # x_ref: (TC, TB, W)  w_ref: (TC, F, W)  b_ref: (TC, 1, F)  o_ref: (TC, TB, F)
    # Batched (per-channel) matmul, batch dims leading on both operands,
    # contraction on W.  Output block shape matches o_ref -> no relayout.
    out = jax.lax.dot_general(
        x_ref[...], w_ref[...],
        dimension_numbers=(((2,), (2,)), ((0,), (0,))),
        preferred_element_type=jnp.float32)          # (TC, TB, F)
    o_ref[...] = (out + b_ref[...]).astype(o_ref.dtype)


# ----------------------------------------------------------------------------
# Forward wrappers
# ----------------------------------------------------------------------------
def _forward_shared(x, weight, bias, compute_dtype):
    B, W, C = x.shape
    F = weight.shape[0]
    in_dtype = jnp.dtype(compute_dtype) if compute_dtype is not None else x.dtype
    out_dtype = x.dtype
    budget, vmem_limit = _vmem_budgets()

    rows = B * C
    # Wrapper-side relayout fused with the (optional) cast: (B, W, C) -> (B*C, W).
    # W becomes the lane dim, so x blocks are lane-dense and the kernel does a
    # plain 2-D matmul (no per-step XLU transpose / materializing reshape).
    x_rows = jnp.transpose(x, (0, 2, 1)).reshape(rows, W).astype(in_dtype)
    wb = weight.astype(in_dtype)                      # (F, W), grid-invariant
    b2 = bias.astype(jnp.float32).reshape(1, F)       # f32 bias, lane-aligned

    sm_in = _sublane_multiple(in_dtype)
    sm = max(sm_in, _sublane_multiple(out_dtype))
    # (8/16,128)-padded, double-buffered VMEM costs.
    resident = 2 * (_round_up(F, sm_in) * _lane_row_bytes(W, in_dtype)
                    + 8 * _lane_row_bytes(F, jnp.float32))
    per_row = 2 * (_lane_row_bytes(W, in_dtype) + _lane_row_bytes(F, out_dtype))

    tr = max(1, (budget - resident) // per_row)
    if tr >= rows:
        tr = rows
    else:
        tr = max(sm, (tr // sm) * sm)                 # keep sublane dim aligned
    if tr == rows and rows >= 2 * sm:
        tr = _round_up(-(-rows // 2), sm)             # >=2 steps for v7x megacore
    tr = min(tr, rows)
    grid = (pl.cdiv(rows, tr),)

    out_rows = pl.pallas_call(
        _shared_kernel,
        out_shape=jax.ShapeDtypeStruct((rows, F), out_dtype),
        grid_spec=pltpu.PrefetchScalarGridSpec(
            num_scalar_prefetch=0,
            grid=grid,
            in_specs=[
                pl.BlockSpec((tr, W), lambda r: (r, 0)),
                pl.BlockSpec((F, W), lambda r: (0, 0)),   # resident weight
                pl.BlockSpec((1, F), lambda r: (0, 0)),   # resident bias
            ],
            out_specs=pl.BlockSpec((tr, F), lambda r: (r, 0)),
        ),
        compiler_params=pltpu.CompilerParams(
            dimension_semantics=("parallel",),
            vmem_limit_bytes=int(vmem_limit)),
    )(x_rows, wb, b2)

    # Single XLA transpose back to the PyTorch (B, F, C) layout.
    return jnp.transpose(out_rows.reshape(B, C, F), (0, 2, 1))


def _forward_individual(x, weights, biases, compute_dtype):
    B, W, C = x.shape
    F = weights.shape[1]
    in_dtype = jnp.dtype(compute_dtype) if compute_dtype is not None else x.dtype
    out_dtype = x.dtype
    budget, vmem_limit = _vmem_budgets()

    # (B, W, C) -> (C, B, W): channel becomes the leading batch dim of a
    # batched MXU matmul and W sits in lanes.  Fused with the cast.
    x_cbw = jnp.transpose(x, (2, 0, 1)).astype(in_dtype)
    wb = weights.astype(in_dtype)                     # (C, F, W)
    b3 = biases.astype(jnp.float32).reshape(C, 1, F)  # f32 bias, lane-aligned

    sm_in = _sublane_multiple(in_dtype)
    sm = max(sm_in, _sublane_multiple(out_dtype))

    # Per-channel padded cost of the weight + bias blocks (double-buffered).
    # Channel is a leading dim now, so TC needs no 8/128 alignment -- any C
    # (321, 862, ...) gets a tile that fits the budget.
    per_c = 2 * (_round_up(F, sm_in) * _lane_row_bytes(W, in_dtype)
                 + 8 * _lane_row_bytes(F, jnp.float32))
    tc = min(C, max(1, (budget // 2) // per_c))
    nc = pl.cdiv(C, tc)

    remaining = max(0, budget - tc * per_c)
    per_b_row = 2 * tc * (_lane_row_bytes(W, in_dtype) + _lane_row_bytes(F, out_dtype))
    tb = max(1, remaining // per_b_row)
    if tb >= B:
        tb = B
    else:
        tb = max(sm, (tb // sm) * sm)
    if nc == 1 and tb == B and B >= 2 * sm:
        tb = _round_up(-(-B // 2), sm)                # >=2 steps for v7x megacore
    tb = min(tb, B)
    nb = pl.cdiv(B, tb)

    out_cbf = pl.pallas_call(
        _individual_kernel,
        out_shape=jax.ShapeDtypeStruct((C, B, F), out_dtype),
        grid_spec=pltpu.PrefetchScalarGridSpec(
            num_scalar_prefetch=0,
            # batch is the fastest-varying grid axis -> the (TC, F, W) weight
            # block index is unchanged across the inner loop (no re-fetch).
            grid=(nc, nb),
            in_specs=[
                pl.BlockSpec((tc, tb, W), lambda c, b: (c, b, 0)),
                pl.BlockSpec((tc, F, W), lambda c, b: (c, 0, 0)),
                pl.BlockSpec((tc, 1, F), lambda c, b: (c, 0, 0)),
            ],
            out_specs=pl.BlockSpec((tc, tb, F), lambda c, b: (c, b, 0)),
        ),
        compiler_params=pltpu.CompilerParams(
            dimension_semantics=("parallel", "parallel"),
            vmem_limit_bytes=int(vmem_limit)),
    )(x_cbw, wb, b3)

    return jnp.transpose(out_cbf, (1, 2, 0))          # (C, B, F) -> (B, F, C)


def ltsf_linear_forward(x, params, individual, compute_dtype=None):
    """x: (B, W, C). Returns (B, F, C), matching the PyTorch forward."""
    if individual:
        weights, biases = params
        return _forward_individual(x, weights, biases, compute_dtype)
    weight, bias = params
    return _forward_shared(x, weight, bias, compute_dtype)


# ----------------------------------------------------------------------------
# Parameter init + pure-JAX reference (for the self-check)
# ----------------------------------------------------------------------------
def _init_params(key, window_size, forecast_size, channels, individual):
    # torch.nn.Linear-style init: U(-1/sqrt(in), 1/sqrt(in)).
    bound = 1.0 / float(window_size) ** 0.5
    kw, kb = jax.random.split(key)
    if individual:
        weights = jax.random.uniform(
            kw, (channels, forecast_size, window_size),
            minval=-bound, maxval=bound, dtype=jnp.float32)
        biases = jax.random.uniform(
            kb, (channels, forecast_size),
            minval=-bound, maxval=bound, dtype=jnp.float32)
        return weights, biases
    weight = jax.random.uniform(
        kw, (forecast_size, window_size),
        minval=-bound, maxval=bound, dtype=jnp.float32)
    bias = jax.random.uniform(
        kb, (forecast_size,), minval=-bound, maxval=bound, dtype=jnp.float32)
    return weight, bias


def _reference(x, params, individual):
    if individual:
        weights, biases = params
        return (jnp.einsum("bwc,cfw->bfc", x, weights)
                + jnp.transpose(biases)[None, :, :])
    weight, bias = params
    return jnp.einsum("bwc,fw->bfc", x, weight) + bias[None, :, None]


if __name__ == "__main__":
    # Make the f32 reference einsum use true f32 accumulation for a tight check.
    jax.config.update("jax_default_matmul_precision", "highest")

    B, W, F, C = 8, 16, 32, 4   # batch, window_size, forecast_size, channels
    key = jax.random.PRNGKey(0)
    kx, kps, kpi = jax.random.split(key, 3)
    x = jax.random.normal(kx, (B, W, C), dtype=jnp.float32)

    ok = True

    # individual = False (shared linear applied along the time axis)
    p_shared = _init_params(kps, W, F, C, individual=False)
    ref_s = _reference(x, p_shared, individual=False)
    y_s = jax.block_until_ready(ltsf_linear_forward(x, p_shared, individual=False))
    ok &= bool(jnp.allclose(y_s, ref_s, rtol=1e-4, atol=1e-4))
    ok &= y_s.shape == (B, F, C)

    # individual = True (per-channel linear layers)
    p_indiv = _init_params(kpi, W, F, C, individual=True)
    ref_i = _reference(x, p_indiv, individual=True)
    y_i = jax.block_until_ready(ltsf_linear_forward(x, p_indiv, individual=True))
    ok &= bool(jnp.allclose(y_i, ref_i, rtol=1e-4, atol=1e-4))
    ok &= y_i.shape == (B, F, C)

    # bf16 compute path (halves HBM traffic; f32 accumulation) -- loose check.
    y_sb = jax.block_until_ready(
        ltsf_linear_forward(x, p_shared, individual=False,
                            compute_dtype=jnp.bfloat16))
    ok &= bool(jnp.allclose(y_sb, ref_s, rtol=5e-2, atol=5e-2))
    y_ib = jax.block_until_ready(
        ltsf_linear_forward(x, p_indiv, individual=True,
                            compute_dtype=jnp.bfloat16))
    ok &= bool(jnp.allclose(y_ib, ref_i, rtol=5e-2, atol=5e-2))

    if ok:
        print("KERNEL_OK")
    else:
        raise SystemExit("mismatch vs. reference")
</pallas_src>

<mosaic_0001>
module attributes {stable_mosaic.version = 11 : i64} {
  func.func @_shared_kernel(%arg0: i32, %arg1: memref<16x16xf32, #tpu.memory_space<vmem>>, %arg2: memref<32x16xf32, #tpu.memory_space<vmem>>, %arg3: memref<1x32xf32, #tpu.memory_space<vmem>>, %arg4: memref<16x32xf32, #tpu.memory_space<vmem>>) attributes {dimension_semantics = [#tpu.dimension_semantics<parallel>], iteration_bounds = array<i64: 2>, scalar_prefetch = 0 : i64, scratch_operands = 0 : i64, tpu.core_type = #tpu.core_type<tc>, window_params = [{transform_indices = @transform_0, window_bounds = array<i64: 16, 16>}, {pipeline_mode = #tpu.pipeline_mode<synchronous>, transform_indices = @transform_1, window_bounds = array<i64: 32, 16>}, {pipeline_mode = #tpu.pipeline_mode<synchronous>, transform_indices = @transform_2, window_bounds = array<i64: 1, 32>}, {transform_indices = @transform_3, window_bounds = array<i64: 16, 32>}]} {
    %c0 = arith.constant 0 : index
    %c0_0 = arith.constant 0 : index
    %0 = vector.load %arg1[%c0, %c0_0] : memref<16x16xf32, #tpu.memory_space<vmem>>, vector<16x16xf32>
    %c0_1 = arith.constant 0 : index
    %c0_2 = arith.constant 0 : index
    %1 = vector.load %arg2[%c0_1, %c0_2] : memref<32x16xf32, #tpu.memory_space<vmem>>, vector<32x16xf32>
    %cst = arith.constant dense<0.000000e+00> : vector<16x32xf32>
    %2 = tpu.matmul %0, %1, %cst {dimension_numbers = #tpu.dot_dimension_numbers<[1], [1], [0], [0], [0, 0, 1, 0], [], []>, precision = #tpu.contract_precision<fp32>} : vector<16x16xf32>, vector<32x16xf32>, vector<16x32xf32> -> vector<16x32xf32>
    %c0_3 = arith.constant 0 : index
    %c0_4 = arith.constant 0 : index
    %3 = vector.load %arg3[%c0_3, %c0_4] : memref<1x32xf32, #tpu.memory_space<vmem>>, vector<1x32xf32>
    %4 = vector.broadcast %3 : vector<1x32xf32> to vector<16x32xf32>
    %5 = arith.addf %2, %4 : vector<16x32xf32>
    %c0_5 = arith.constant 0 : index
    %c0_6 = arith.constant 0 : index
    %6 = vector.load %arg4[%c0_5, %c0_6] : memref<16x32xf32, #tpu.memory_space<vmem>>, vector<16x32xf32>
    tpu.vector_store %arg4[%c0_5, %c0_6], %5 {strides = array<i32>} : memref<16x32xf32, #tpu.memory_space<vmem>>, vector<16x32xf32>,
    return
  }
  func.func @transform_0(%arg0: i32) -> (i32, i32) {
    %c0_i32 = arith.constant 0 : i32
    %c0_i32_0 = arith.constant 0 : i32
    return %arg0, %c0_i32 : i32, i32
  }
  func.func @transform_1(%arg0: i32) -> (i32, i32) {
    %c0_i32 = arith.constant 0 : i32
    %c0_i32_0 = arith.constant 0 : i32
    %c0_i32_1 = arith.constant 0 : i32
    return %c0_i32, %c0_i32_0 : i32, i32
  }
  func.func @transform_2(%arg0: i32) -> (i32, i32) {
    %c0_i32 = arith.constant 0 : i32
    %c0_i32_0 = arith.constant 0 : i32
    %c0_i32_1 = arith.constant 0 : i32
    return %c0_i32, %c0_i32_0 : i32, i32
  }
  func.func @transform_3(%arg0: i32) -> (i32, i32) {
    %c0_i32 = arith.constant 0 : i32
    %c0_i32_0 = arith.constant 0 : i32
    return %arg0, %c0_i32 : i32, i32
  }
}

</mosaic_0001>

<bundles_post_ra>
// kernel: tpu_custom_call.1
= control target key start
LH: loop header
LB: loop body
LE: loop exit
PB: predicated region body
PF: predicated region fallthrough
CT: control target
= control target key end

     0   :  { %8 = vsyncpa [#allocation3], 0  ;;  %s1254_s0 = inlined_call_operand.vmem [shape: f32[32,16], index: 0, kind: input, shape index: {}]   ;;  %s1255_s1 = inlined_call_operand.vmem [shape: f32[32,16], index: 1, kind: input, shape index: {}]   ;;  %s1256_s2 = inlined_call_operand.vmem [shape: f32[1,32], index: 2, kind: input, shape index: {}]   ;;  %s1257_s3 = inlined_call_operand.hbm [shape: f32[32,32], index: 3, kind: output, shape index: {}]  }
   0x1   :  { %10 = vsyncpa [#allocation3 + $0x1], 0  ;;  %s1115_s12 = smov 0   ;;  %s1117_s13 = smov 0  }
   0x2   :  { %s1119_s14 = smov 0   ;;  %s1121_s15 = smov 0  }
   0x3 LB: > { %s1136_s16 = sadd.s32 4294967295, %s1090_s15   ;;  %s811_s17 = sadd.s32 4294967294, %s1090_s15   ;;  %s1090_s15 = sphi %s1121_s15, %s1263_s15   ;;  %s1086_s14 = sphi %s1119_s14, %s1262_s14   ;;  %s1082_s13 = sphi %s1117_s13, %s1261_s13   ;;  %s1078_s12 = sphi %s1115_s12, %s1260_s12  }
   0x4   : > { %s1140_s18 = sadd.s32 1, %s1090_s15   ;;  %s91_s19 = sadd.s32 1, %s1086_s14 }
   0x5   : > { %s88_s20 = ssub.s32 %s1090_s15, %s1140_s18  ;;  %p101_p0 = scmp.ne.s32.totalorder %s1086_s14, %s1082_s13 }
   0x6   : > { %p89_p1 = scmp.eq.s32.totalorder %s88_s20, 0  ;;  %p102_p2 = scmp.eq.s32.totalorder %s1136_s16, 1 }
   0x7   : > { %p107_p3 = scmp.ne.s32.totalorder %s1082_s13, %s1078_s12  ;;  %p108_p4 = scmp.eq.s32.totalorder %s811_s17, 1 }
   0x8   : > { %s1151_s21 = scalar_select %p89_p1, %s1086_s14, %s91_s19  }
   0x9   : > { %p1153_p5 = por %p102_p2, %p101_p0  ;;  %p1157_p6 = por %p108_p4, %p107_p3 }
   0xa   : > { %p814_p7 = scmp.ge.s32.totalorder %s1090_s15, 1  ;;  %p141_p8 = scmp.lt.s32.totalorder %s1090_s15, 3 }
   0xc   : > { %p142_p9 = pnand %p814_p7, %p141_p8 }
   0xd   : > { %v174_v0 = vld [vmem:[%s1255_s1] sm:$0xff] (!%p142_p9)  ;;  %v175_v1 = vld [vmem:[%s1255_s1 + $0x8] sm:$0xff] (!%p142_p9)  ;;  %vm185_vm0 = vcmask (!%p142_p9), 130048   ;;  %v176_v2 = vld [vmem:[%s1255_s1 + $0x10] sm:$0xff] (!%p142_p9)  ;;  %s816_s30 = sshll.u32 (!%p142_p9), %s1136_s16, 1  ;;  %s162_s10 = sand.u32 (!%p142_p9), 1, %s1082_s13  }
   0xe   : > { %145 = sbr.rel (%p142_p9) target bundleno = 301 (0x12d), region = 32  ;;  %v193_v3 = vsel (!%p142_p9), %vm185_vm0, %v174_v0, 0  ;;  %v196_v4 = vsel (!%p142_p9), %vm185_vm0, %v175_v1, 0  ;;  %v177_v5 = vld [vmem:[%s1255_s1 + $0x18] sm:$0xff] (!%p142_p9)  ;;  %v199_v6 = vsel (!%p142_p9), %vm185_vm0, %v176_v2, 0  ;;  %p166_p10 = scmp.lt.s32.totalorder (!%p142_p9), %s816_s30, 3 }
   0xf   : > { %v205_v7 = vand.u32 (!%p142_p9), 4294901760, %v193_v3  ;;  %v208_v8 = vand.u32 (!%p142_p9), 4294901760, %v196_v4  ;;  %v202_v9 = vsel (!%p142_p9), %vm185_vm0, %v177_v5, 0  ;;  %v211_v10 = vand.u32 (!%p142_p9), 4294901760, %v199_v6  ;;  %s815_s11 = sshll.u32 (!%p142_p9), %s162_s10, 4  ;;  %s824_s25 = sshll.u32 (!%p142_p9), %s1136_s16, 8 }
  0x10   : > { %v214_v11 = vand.u32 (!%p142_p9), 4294901760, %v202_v9  ;;  %v818_v50 = vld [vmem:[%s1256_s2] ss:$0 sm:$0xff] (!%p142_p9)  ;;  %s164_s20 = scalar_lea.vmem (!%p142_p9), [#allocation2], %s815_s11  ;;  %vm732_vm1 = vcmask (!%p142_p9), 261120   ;;  %s1211_s28 = scalar_lea.hbm (!%p142_p9), %s1257_s3, %s824_s25 }
  0x11   : > { %v1180_v12 = vpack.c.bf16 (!%p142_p9), %v208_v8, %v205_v7  ;;  %v295_v13 = vsub.f32 (!%p142_p9), %v193_v3, %v205_v7  ;;  %v302_v14 = vsub.f32 (!%p142_p9), %v196_v4, %v208_v8  ;;  %v309_v15 = vsub.f32 (!%p142_p9), %v199_v6, %v211_v10  ;;  %s749_s24 = sshll.u32 (!%p142_p9), %s164_s20, 4  ;;  %s1213_s16 = scalar_lea.sflag (!%p142_p9), [#allocation3], %s162_s10  ;;  %s1206_s24 = int_to_ptr.vmem [resolvable:$true] %s749_s24 }
  0x12   : > { %v1182_v16 = vpack.c.bf16 (!%p142_p9), %v214_v11, %v211_v10  ;;  %v316_v17 = vsub.f32 (!%p142_p9), %v202_v9, %v214_v11  ;;  %s1028_s29 = scalar_lea.vmem (!%p142_p9), %s1206_s24, 256 }
  0x13   : > { %928 = vmatprep.subr.bf16.mxu1 (!%p142_p9), %v1180_v12  ;;  %952 = vmatprep.subr.bf16.mxu0 (!%p142_p9), %v1180_v12  ;;  %v296_v18 = vand.u32 (!%p142_p9), 4294901760, %v295_v13  ;;  %v303_v19 = vand.u32 (!%p142_p9), 4294901760, %v302_v14  ;;  %v310_v22 = vand.u32 (!%p142_p9), 4294901760, %v309_v15  ;;  %v943_v48 = vpack.c.bf16 (!%p142_p9), %v302_v14, %v295_v13  ;;  %p1029_p11 = scmp.ne.s32.totalorder (!%p142_p9), %s1206_s24, %s1028_s29 }
  0x14   : > { %930 = vmatpush3.bf16.xpose.msra.mxu1 (!%p142_p9), %v1180_v12  ;;  %954 = vmatpush3.bf16.xpose.msra.mxu0 (!%p142_p9), %v1180_v12  ;;  %v317_v26 = vand.u32 (!%p142_p9), 4294901760, %v316_v17  ;;  %v947_v49 = vpack.c.bf16 (!%p142_p9), %v316_v17, %v309_v15 }
  0x15   : > { %s1265_s30 = smov (!%p166_p10, %s816_s30), 3  ;;  %932 = vmatprep.subr.bf16.mxu1 %v1182_v16  ;;  %956 = vmatprep.subr.bf16.mxu0 %v1182_v16  ;;  %v297_v24 = vsub.f32 %v295_v13, %v296_v18  ;;  %v304_v25 = vsub.f32 %v302_v14, %v303_v19  ;;  %v311_v35 = vsub.f32 %v309_v15, %v310_v22  ;;  %p1030_p12 = pnand %p1029_p11, %p1153_p5 }
  0x16   : > { %s817_s6 = sshll.u32 %s1265_s30, 3  ;;  %v318_v36 = vsub.f32 %v316_v17, %v317_v26  ;;  %v959_v38 = vpack.c.bf16 %v303_v19, %v296_v18  ;;  %v963_v47 = vpack.c.bf16 %v317_v26, %v310_v22  ;;  %s1092_s30 = smov [#allocation2]  }
  0x17   : > { %s169_s9 = scalar_lea.vmem %s1254_s0, %s817_s6  ;;  %v298_v29 = vand.u32 4294901760, %v297_v24  ;;  %v305_v30 = vand.u32 4294901760, %v304_v25  ;;  %v312_v42 = vand.u32 4294901760, %v311_v35  ;;  %p1031_p13 = pneg %p1030_p12 }
  0x18   : > { %v172_v20 = vld [vmem:[%s169_s9] sm:$0xff]  ;;  %v173_v21 = vld [vmem:[%s169_s9 + $0x8] sm:$0xff]  ;;  %v319_v43 = vand.u32 4294901760, %v318_v36  ;;  %s1032_s4 = sshll.u32 %s1092_s30, 4  ;;  %s1033_s4 = int_to_ptr.vmem [resolvable:$false] %s1032_s4 }
  0x19   : > { %v187_v23 = vsel %vm185_vm0, %v172_v20, 0  ;;  %v190_v28 = vsel %vm185_vm0, %v173_v21, 0  ;;  %v935_v33 = vpack.c.bf16 %v305_v30, %v298_v29  ;;  %s1034_s5 = scalar_lea.vmem %s1033_s4, 512  ;;  %p1035_p0 = scmp.lt.s32.totalorder %s1206_s24, %s1033_s4 }
  0x1a   : > { %v273_v27 = vand.u32 4294901760, %v187_v23  ;;  %v283_v31 = vand.u32 4294901760, %v190_v28  ;;  %v939_v46 = vpack.c.bf16 %v319_v43, %v312_v42  ;;  %p1036_p1 = scmp.lt.s32.totalorder %s1034_s5, %s1028_s29 }
  0x1c   : > { %v274_v32 = vsub.f32 %v187_v23, %v273_v27  ;;  %v284_v34 = vsub.f32 %v190_v28, %v283_v31  ;;  %934 = vmatpush3.bf16.xpose.msra.mxu1 %v1182_v16  ;;  %958 = vmatpush3.bf16.xpose.msra.mxu0 %v1182_v16  ;;  %p1037_p2 = por %p1036_p1, %p1035_p0 }
  0x1d   : > { %936 = vmatprep.subr.bf16.mxu1 %v935_v33  ;;  %960 = vmatprep.subr.bf16.mxu0 %v959_v38 }
  0x1e   : > { %v275_v37 = vand.u32 4294901760, %v274_v32  ;;  %v285_v39 = vand.u32 4294901760, %v284_v34  ;;  %p1038_p3 = pnand %p1037_p2, %p1031_p13 }
  0x20   : > { %v276_v40 = vsub.f32 %v274_v32, %v275_v37  ;;  %902 = vmatprep.mubr.f32.mxu0 %v275_v37  ;;  %v286_v41 = vsub.f32 %v284_v34, %v285_v39 }
  0x22   : > { %v277_v44 = vand.u32 4294901760, %v276_v40  ;;  %v287_v45 = vand.u32 4294901760, %v286_v41 }
  0x23   : > { %903 = vmatmul.mubr.f32.vlgmr.msra.gmra.mrb[0].mxu0 %v285_v39 }
  0x24   : > { %869 = vmatprep.mubr.f32.mxu1 %v277_v44  ;;  %962 = vmatpush3.bf16.xpose.msra.mxu0 %v959_v38 }
  0x25   : > { %870 = vmatmul.mubr.f32.vlgmr.msra.gmra.mrb[0].mxu1 %v287_v45  ;;  %964 = vmatprep.subr.bf16.mxu0 %v963_v47 }
  0x26   : > { %938 = vmatpush3.bf16.xpose.msra.mxu1 %v935_v33  ;;  %880 = vmatprep.mubr.f32.mxu1 %v273_v27 }
  0x27   : > { %940 = vmatprep.subr.bf16.mxu1 %v939_v46  ;;  %913 = vmatprep.mubr.f32.mxu0 %v273_v27 }
  0x2c   : > { %966 = vmatpush3.bf16.xpose.msra.mxu0 %v963_v47 }
  0x2d   : > { %968 = vmatprep.subr.bf16.mxu0 %v1180_v12 }
  0x2e   : > { %942 = vmatpush3.bf16.xpose.msra.mxu1 %v939_v46 }
  0x2f   : > { %944 = vmatprep.subr.bf16.mxu1 %v943_v48 }
  0x33   : > { %914 = vmatmul.mubr.f32.vlgmr.msra.gmra.mrb[0].mxu0 %v283_v31 }
  0x34   : > { %970 = vmatpush3.bf16.xpose.msra.mxu0 %v1180_v12  ;;  %924 = vmatprep.mubr.f32.mxu0 %v273_v27 }
  0x35   : > { %881 = vmatmul.mubr.f32.vlgmr.msra.gmra.mrb[0].mxu1 %v283_v31  ;;  %972 = vmatprep.subr.bf16.mxu0 %v1182_v16 }
  0x36   : > { %946 = vmatpush3.bf16.xpose.msra.mxu1 %v943_v48  ;;  %891 = vmatprep.mubr.f32.mxu1 %v274_v32 }
  0x37   : > { %948 = vmatprep.subr.bf16.mxu1 %v947_v49 }
  0x3c   : > { %974 = vmatpush3.bf16.xpose.msra.mxu0 %v1182_v16 }
  0x3e   : > { %950 = vmatpush3.bf16.xpose.msra.mxu1 %v947_v49 }
  0x43   : > { %925 = vmatmul.mubr.f32.vlgmr.msra.gmra.mrb[0].mxu0 %v283_v31 }
  0x45   : > { %892 = vmatmul.mubr.f32.vlgmr.msra.gmra.mrb[0].mxu1 %v284_v34 }
 0x116   : > { %v926_v52 = vpop.f32.mrb[0].mxu0 }
 0x117   : > { %v722_v55 = vpop.f32.mrb[1].mxu0 }
 0x118   : > { %v893_v51 = vpop.f32.mrb[0].mxu1 }
 0x119   : > { %v975_v53 = vadd.f32 %v893_v51, %v818_v50  ;;  %v466_v54 = vpop.f32.mrb[1].mxu1 }
 0x11a   : > { %v977_v56 = vadd.f32 %v818_v50, %v466_v54 }
 0x11b   : > { %v976_v57 = vadd.f32 %v975_v53, %v926_v52 }
 0x11c   : > { %v978_v58 = vadd.f32 %v977_v56, %v722_v55 }
 0x11d   : > { %734 = vst.msk [vmem:[%s164_s20 + $0x8] sm:$0xff] %vm732_vm1, %v976_v57 }
 0x11e   : > { %733 = vst.msk [vmem:[%s164_s20] sm:$0xff] %vm732_vm1, %v978_v58 }
 0x11f   : > { %1041 = shalt.err (!%p1038_p3)
}
 0x120   : > { %s1042_s6 = scalar_lea.hbm %s1211_s28, 256  ;;  %s1046_s9 = scalar_lea.hbm %s1257_s3, 512 }
 0x121   : > { %p1043_p4 = scmp.ne.s32.totalorder %s1211_s28, %s1042_s6  ;;  %p1047_p9 = scmp.lt.u32.totalorder %s1211_s28, %s1257_s3 }
 0x122   : > { %p1048_p10 = scmp.lt.u32.totalorder %s1046_s9, %s1042_s6  ;;  %p1050_p12 = scmp.lt.u32.totalorder %s1042_s6, %s1211_s28 }
 0x123   : > { %p1044_p7 = pnand %p1043_p4, %p1153_p5 }
 0x124   : > { %p1049_p11 = por %p1048_p10, %p1047_p9 }
 0x125   : > { %p1045_p8 = pneg %p1044_p7 }
 0x126   : > { %p1051_p13 = por %p1050_p12, %p1049_p11 }
 0x128   : > { %p1052_p0 = pnand %p1051_p13, %p1045_p8 }
 0x12a   : > { %1055 = shalt.err (!%p1052_p0)
}
 0x12b   : > { %s1093_s17 = smov 128   ;;  %s1094_s19 = smov 8  }
 0x12c   : > { %987 = dma.vmem_to_hbm [thread:$0]  (%p1153_p5), %s1206_s24, 256, %s1211_s28, %s1213_s16, %s1093_s17, %s1093_s17, %s1094_s19  }
 0x12d PF: > { %p993_p1 = scmp.ge.s32.totalorder %s1090_s15, 2  ;;  %s764_s20 = sand.u32 1, %s1078_s12  }
 0x12e   : > { %s765_s25 = scalar_lea.sflag [#allocation3], %s764_s20 }
 0x12f   : > { %p990_p2 = pnand %p993_p1, %p1157_p6 }
 0x131   : > { %1073 = dma.done.wait (!%p990_p2), %s765_s25, 256  }
 0x132   : > { %1075 = vsyncadd (!%p990_p2), %s765_s25, 4294967040  ;;  %p13_p3 = scmp.ge.s32.totalorder %s1140_s18, 4   ;;  %s1260_s12 = smov %s1082_s13 }
 0x133   : > { %s1261_s13 = smov %s1086_s14  ;;  %s1262_s14 = smov %s1151_s21 }
 0x134   : > { %s1263_s15 = smov %s1140_s18  ;;  %15 = sbr.rel (!%p13_p3) target bundleno = 3 (0x3), region = 67 }
 0x13b   :  { %770 = vsyncpa [#allocation3], 1 }
 0x13c   :  { %772 = vsyncpa [#allocation3 + $0x1], 1 }

</bundles_post_ra>
